<compile_context>
chip_gen: v7x
topology: tpu7x:2x2x1
jax: 0.10.0
libtpu: 0.0.40
codegen_flags: <defaults>
</compile_context>

<pallas_src>
import functools

import numpy as np
import jax
import jax.numpy as jnp
from jax.experimental import pallas as pl
from jax.experimental.pallas import tpu as pltpu

EPS = 1e-5


def _round_up(x, m):
    return (x + m - 1) // m * m


# --------------------------------------------------------------------------
# Pallas kernels
# --------------------------------------------------------------------------
def _mm_kernel(*refs, relu, has_affine, has_residual):
    """Tiled matmul with optional fused affine (folded BN), residual add, ReLU."""
    a_ref, b_ref = refs[0], refs[1]
    idx = 2
    if has_affine:
        s_ref, c_ref = refs[idx], refs[idx + 1]
        idx += 2
    if has_residual:
        r_ref = refs[idx]
        idx += 1
    o_ref = refs[idx]
    acc_ref = refs[idx + 1]

    @pl.when(pl.program_id(2) == 0)
    def _init():
        acc_ref[...] = jnp.zeros_like(acc_ref)

    acc_ref[...] += jnp.dot(a_ref[...], b_ref[...],
                            preferred_element_type=jnp.float32)

    @pl.when(pl.program_id(2) == pl.num_programs(2) - 1)
    def _finish():
        y = acc_ref[...]
        if has_affine:
            y = y * s_ref[...] + c_ref[...]
        if has_residual:
            y = y + r_ref[...].astype(jnp.float32)
        if relu:
            y = jnp.maximum(y, 0.0)
        o_ref[...] = y.astype(o_ref.dtype)


def _pick_tk(K):
    Kp = _round_up(K, 128)
    if Kp <= 1024:
        return Kp, Kp
    for tk in (1024, 896, 768, 640, 512, 384, 256, 128):
        if Kp % tk == 0:
            return tk, Kp
    return 128, Kp


def _pick_tn(N):
    Np = _round_up(N, 128)
    if Np <= 512:
        return Np, Np
    for tn in (512, 384, 256, 128):
        if Np % tn == 0:
            return tn, Np
    return 128, Np


@functools.partial(jax.jit, static_argnames=("relu", "out_dtype"))
def matmul_fused(a, b, scale=None, bias=None, residual=None, relu=False,
                 out_dtype=jnp.bfloat16):
    """out[m,n] = relu?( (sum_k a[m,k] b[k,n]) *scale[n] +bias[n] +residual[m,n] )

    a, b are cast to bfloat16 (MXU-native); accumulation and epilogue are f32.
    """
    M, K = a.shape
    _, N = b.shape
    has_affine = scale is not None
    has_residual = residual is not None

    tm = 256 if M >= 256 else _round_up(max(M, 1), 16)
    tk, Kp = _pick_tk(K)
    tn, Np = _pick_tn(N)
    Mp = _round_up(M, tm)

    a_p = jnp.pad(a.astype(jnp.bfloat16), ((0, Mp - M), (0, Kp - K)))
    b_p = jnp.pad(b.astype(jnp.bfloat16), ((0, Kp - K), (0, Np - N)))

    operands = [a_p, b_p]
    in_specs = [
        pl.BlockSpec((tm, tk), lambda i, j, k: (i, k)),
        pl.BlockSpec((tk, tn), lambda i, j, k: (k, j)),
    ]
    if has_affine:
        operands.append(jnp.pad(scale.astype(jnp.float32), (0, Np - N)).reshape(1, Np))
        operands.append(jnp.pad(bias.astype(jnp.float32), (0, Np - N)).reshape(1, Np))
        in_specs.append(pl.BlockSpec((1, tn), lambda i, j, k: (0, j)))
        in_specs.append(pl.BlockSpec((1, tn), lambda i, j, k: (0, j)))
    if has_residual:
        operands.append(jnp.pad(residual, ((0, Mp - M), (0, Np - N))))
        in_specs.append(pl.BlockSpec((tm, tn), lambda i, j, k: (i, j)))

    out = pl.pallas_call(
        functools.partial(_mm_kernel, relu=relu, has_affine=has_affine,
                          has_residual=has_residual),
        out_shape=jax.ShapeDtypeStruct((Mp, Np), out_dtype),
        grid_spec=pltpu.PrefetchScalarGridSpec(
            num_scalar_prefetch=0,
            grid=(Mp // tm, Np // tn, Kp // tk),
            in_specs=in_specs,
            out_specs=pl.BlockSpec((tm, tn), lambda i, j, k: (i, j)),
            scratch_shapes=[pltpu.VMEM((tm, tn), jnp.float32)],
        ),
        compiler_params=pltpu.CompilerParams(
            dimension_semantics=("parallel", "parallel", "arbitrary")),
    )(*operands)
    return out[:M, :N]


def _maxpool_kernel(e0, o0, e1, o1, e2, o2, out_ref):
    """3x3/2 max pool: inputs are (rows, Wo+1, C) even-col and (rows, Wo, C)
    odd-col deinterleaved views of the (-inf padded) input, one pair per dy."""
    wo = out_ref.shape[1]

    def tap(e_ref, o_ref):
        e = e_ref[...]
        return jnp.maximum(jnp.maximum(e[:, :wo, :], o_ref[...]),
                           e[:, 1:wo + 1, :])

    out_ref[...] = jnp.maximum(jnp.maximum(tap(e0, o0), tap(e1, o1)),
                               tap(e2, o2))


@jax.jit
def maxpool3x3s2p1(x):
    n, h, w, c = x.shape
    ho = (h - 1) // 2 + 1
    wo = (w - 1) // 2 + 1
    xp = jnp.pad(x, ((0, 0), (1, 1), (1, 1), (0, 0)),
                 constant_values=-jnp.inf)
    evens, odds = [], []
    for dy in range(3):
        rv = xp[:, dy:dy + 2 * (ho - 1) + 1:2, :, :]       # (n, ho, w+2, c)
        ev = rv[:, :, 0::2, :][:, :, :wo + 1, :]           # (n, ho, wo+1, c)
        od = rv[:, :, 1::2, :][:, :, :wo, :]               # (n, ho, wo,   c)
        evens.append(ev.reshape(n * ho, wo + 1, c))
        odds.append(od.reshape(n * ho, wo, c))

    rows = n * ho
    tr = min(rows, 512)
    e_spec = pl.BlockSpec((tr, wo + 1, c), lambda i: (i, 0, 0))
    o_spec = pl.BlockSpec((tr, wo, c), lambda i: (i, 0, 0))

    out = pl.pallas_call(
        _maxpool_kernel,
        out_shape=jax.ShapeDtypeStruct((rows, wo, c), x.dtype),
        grid_spec=pltpu.PrefetchScalarGridSpec(
            num_scalar_prefetch=0,
            grid=(pl.cdiv(rows, tr),),
            in_specs=[e_spec, o_spec, e_spec, o_spec, e_spec, o_spec],
            out_specs=pl.BlockSpec((tr, wo, c), lambda i: (i, 0, 0)),
        ),
        compiler_params=pltpu.CompilerParams(
            dimension_semantics=("parallel",)),
    )(evens[0], odds[0], evens[1], odds[1], evens[2], odds[2])
    return out.reshape(n, ho, wo, c)


# --------------------------------------------------------------------------
# Layer helpers (JAX glue + Pallas hot path)
# --------------------------------------------------------------------------
def conv2d_affine(x, w, scale, bias, stride=1, padding=0, dilation=1,
                  relu=False, residual=None, out_dtype=jnp.bfloat16):
    """Conv2d (no conv bias) + per-channel affine (folded BN / bias) + optional
    fused residual add + optional ReLU.  x: [N,H,W,Cin] NHWC, w: [kh,kw,Cin,Cout]."""
    kh, kw, cin, cout = w.shape
    n, h, wd, _ = x.shape
    ho = (h + 2 * padding - dilation * (kh - 1) - 1) // stride + 1
    wo = (wd + 2 * padding - dilation * (kw - 1) - 1) // stride + 1

    xb = x.astype(jnp.bfloat16)
    xp = jnp.pad(xb, ((0, 0), (padding, padding), (padding, padding), (0, 0))) \
        if padding else xb

    if kh == 1 and kw == 1:
        if stride != 1:
            xp = xp[:, ::stride, ::stride, :]
        a = xp.reshape(n * ho * wo, cin)
    else:
        cols = []
        for dy in range(kh):
            for dx in range(kw):
                ys, xs = dy * dilation, dx * dilation
                cols.append(xp[:, ys:ys + stride * (ho - 1) + 1:stride,
                               xs:xs + stride * (wo - 1) + 1:stride, :])
        a = jnp.concatenate(cols, axis=-1).reshape(n * ho * wo, kh * kw * cin)

    b = w.astype(jnp.bfloat16).reshape(kh * kw * cin, cout)
    res2d = None if residual is None else residual.reshape(n * ho * wo, cout)
    out = matmul_fused(a, b, scale=scale, bias=bias, residual=res2d,
                       relu=relu, out_dtype=out_dtype)
    return out.reshape(n, ho, wo, cout)


def _interp_matrix(out_size, in_size):
    # PyTorch bilinear, align_corners=False
    scale = in_size / out_size
    dst = np.arange(out_size, dtype=np.float64)
    src = np.maximum((dst + 0.5) * scale - 0.5, 0.0)
    lo = np.minimum(np.floor(src).astype(np.int64), in_size - 1)
    hi = np.minimum(lo + 1, in_size - 1)
    w_hi = (src - lo).astype(np.float32)
    w_lo = (1.0 - w_hi).astype(np.float32)
    m = np.zeros((out_size, in_size), np.float32)
    m[np.arange(out_size), lo] += w_lo
    m[np.arange(out_size), hi] += w_hi
    return jnp.asarray(m)


def bilinear_upsample(x, hout, wout):
    n, hin, win, c = x.shape
    wr = _interp_matrix(hout, hin)
    wc = _interp_matrix(wout, win)
    # rows: [Hout, Hin] @ [Hin, N*Win*C]   (no affine epilogue needed)
    t = jnp.transpose(x, (1, 0, 2, 3)).reshape(hin, n * win * c)
    t = matmul_fused(wr, t, relu=False, out_dtype=jnp.float32)
    t = t.reshape(hout, n, win, c)
    # cols: [Wout, Win] @ [Win, N*Hout*C]
    t = jnp.transpose(t, (2, 1, 0, 3)).reshape(win, n * hout * c)
    t = matmul_fused(wc, t, relu=False, out_dtype=jnp.float32)
    t = t.reshape(wout, n, hout, c)
    return jnp.transpose(t, (1, 2, 0, 3))


# --------------------------------------------------------------------------
# Parameters (deterministic synthetic init)
# --------------------------------------------------------------------------
class KeyGen:
    def __init__(self, seed=0):
        self.base = jax.random.PRNGKey(seed)
        self.i = 0

    def __call__(self):
        k = jax.random.fold_in(self.base, self.i)
        self.i += 1
        return k


def conv_weight(kg, kh, kw, cin, cout):
    std = (2.0 / (kh * kw * cin)) ** 0.5
    return jax.random.normal(kg(), (kh, kw, cin, cout), jnp.float32) * std


def bn_fold(c):
    gamma = jnp.ones((c,), jnp.float32)
    beta = jnp.zeros((c,), jnp.float32)
    mean = jnp.zeros((c,), jnp.float32)
    var = jnp.ones((c,), jnp.float32)
    scale = gamma / jnp.sqrt(var + EPS)
    return scale, beta - mean * scale


def build_head(kg, cin, cmid, cout):
    p = {}
    p['w1'] = conv_weight(kg, 3, 3, cin, cmid)
    p['s1'], p['b1'] = bn_fold(cmid)
    p['w2'] = conv_weight(kg, 1, 1, cmid, cout)
    bound = 1.0 / (cmid ** 0.5)
    p['b2'] = jax.random.uniform(kg(), (cout,), jnp.float32, -bound, bound)
    p['s2'] = jnp.ones((cout,), jnp.float32)
    return p


def build_params(num_classes=11):
    kg = KeyGen(0)
    params = {}
    s, b = bn_fold(64)
    params['stem'] = dict(w=conv_weight(kg, 7, 7, 3, 64), s=s, b=b)

    inplanes, dilation = 64, 1
    cfg = [('layer1', 64, 3, 1, False),
           ('layer2', 128, 4, 2, False),
           ('layer3', 256, 6, 2, True),    # stride replaced with dilation
           ('layer4', 512, 3, 2, True)]
    for name, planes, blocks, stride, dilate in cfg:
        prev_dil = dilation
        if dilate:
            dilation *= stride
            stride = 1
        layer = []
        for bidx in range(blocks):
            if bidx == 0:
                in_c, st, dil = inplanes, stride, prev_dil
                has_ds = (stride != 1) or (inplanes != planes * 4)
            else:
                in_c, st, dil = planes * 4, 1, dilation
                has_ds = False
            bp = dict(stride=st, dilation=dil, downsample=has_ds)
            bp['w1'] = conv_weight(kg, 1, 1, in_c, planes)
            bp['s1'], bp['b1'] = bn_fold(planes)
            bp['w2'] = conv_weight(kg, 3, 3, planes, planes)
            bp['s2'], bp['b2'] = bn_fold(planes)
            bp['w3'] = conv_weight(kg, 1, 1, planes, planes * 4)
            bp['s3'], bp['b3'] = bn_fold(planes * 4)
            if has_ds:
                bp['wd'] = conv_weight(kg, 1, 1, in_c, planes * 4)
                bp['sd'], bp['bd'] = bn_fold(planes * 4)
            layer.append(bp)
        params[name] = layer
        inplanes = planes * 4

    # main classifier: FCNHead(2048, 21) with classifier[4] replaced -> num_classes
    params['classifier'] = build_head(kg, 2048, 512, num_classes)
    # aux classifier (pretrained=True implies aux head): FCNHead(1024, 21)
    params['aux_classifier'] = build_head(kg, 1024, 256, 21)
    return params


# --------------------------------------------------------------------------
# Forward
# --------------------------------------------------------------------------
def bottleneck(x, bp):
    out = conv2d_affine(x, bp['w1'], bp['s1'], bp['b1'], relu=True)
    out = conv2d_affine(out, bp['w2'], bp['s2'], bp['b2'],
                        stride=bp['stride'], padding=bp['dilation'],
                        dilation=bp['dilation'], relu=True)
    if bp['downsample']:
        identity = conv2d_affine(x, bp['wd'], bp['sd'], bp['bd'],
                                 stride=bp['stride'], relu=False)
    else:
        identity = x
    # conv3 + BN + residual add + ReLU fused into one matmul epilogue
    return conv2d_affine(out, bp['w3'], bp['s3'], bp['b3'],
                         relu=True, residual=identity)


def fcn_head(x, p):
    h = conv2d_affine(x, p['w1'], p['s1'], p['b1'], padding=1, relu=True)
    # Dropout(p=0.1) is the identity in eval mode.
    return conv2d_affine(h, p['w2'], p['s2'], p['b2'], relu=False,
                         out_dtype=jnp.float32)


def fcn_resnet50_forward(params, x_nchw):
    x = jnp.transpose(x_nchw, (0, 2, 3, 1)).astype(jnp.float32)  # -> NHWC
    h_in, w_in = x.shape[1], x.shape[2]

    p = params['stem']
    x = conv2d_affine(x, p['w'], p['s'], p['b'], stride=2, padding=3, relu=True)
    x = maxpool3x3s2p1(x)

    feats = {}
    for name in ('layer1', 'layer2', 'layer3', 'layer4'):
        for bp in params[name]:
            x = bottleneck(x, bp)
        if name == 'layer3':
            feats['aux'] = x
    feats['out'] = x

    out = fcn_head(feats['out'], params['classifier'])
    out = bilinear_upsample(out, h_in, w_in)
    aux = fcn_head(feats['aux'], params['aux_classifier'])
    aux = bilinear_upsample(aux, h_in, w_in)

    return {'out': jnp.transpose(out, (0, 3, 1, 2)),   # NCHW, [N, 11, H, W]
            'aux': jnp.transpose(aux, (0, 3, 1, 2))}   # NCHW, [N, 21, H, W]


# --------------------------------------------------------------------------
if __name__ == "__main__":
    params = build_params(num_classes=11)
    x = jax.random.normal(jax.random.PRNGKey(0), (1, 3, 32, 32), jnp.float32)  # NCHW
    result = fcn_resnet50_forward(params, x)
    result = jax.block_until_ready(result)
    assert result['out'].shape == (1, 11, 32, 32), result['out'].shape
    assert result['aux'].shape == (1, 21, 32, 32), result['aux'].shape
    assert bool(jnp.all(jnp.isfinite(result['out'])))
    assert bool(jnp.all(jnp.isfinite(result['aux'])))
    print("KERNEL_OK")
</pallas_src>

<mosaic_0001>
module attributes {stable_mosaic.version = 11 : i64} {
  func.func @_mm_kernel(%arg0: i32, %arg1: i32, %arg2: i32, %arg3: memref<256x256xbf16, #tpu.memory_space<vmem>>, %arg4: memref<256x128xbf16, #tpu.memory_space<vmem>>, %arg5: memref<1x128xf32, #tpu.memory_space<vmem>>, %arg6: memref<1x128xf32, #tpu.memory_space<vmem>>, %arg7: memref<256x128xbf16, #tpu.memory_space<vmem>>, %arg8: memref<256x128xf32, #tpu.memory_space<vmem>>) attributes {dimension_semantics = [#tpu.dimension_semantics<parallel>, #tpu.dimension_semantics<parallel>, #tpu.dimension_semantics<arbitrary>], iteration_bounds = array<i64: 1, 1, 1>, scalar_prefetch = 0 : i64, scratch_operands = 1 : i64, tpu.core_type = #tpu.core_type<tc>, window_params = [{transform_indices = @transform_0, window_bounds = array<i64: 256, 256>}, {transform_indices = @transform_1, window_bounds = array<i64: 256, 128>}, {transform_indices = @transform_2, window_bounds = array<i64: 1, 128>}, {transform_indices = @transform_3, window_bounds = array<i64: 1, 128>}, {transform_indices = @transform_4, window_bounds = array<i64: 256, 128>}]} {
    %c0_i32 = arith.constant 0 : i32
    %0 = arith.cmpi eq, %arg2, %c0_i32 : i32
    %1 = arith.extui %0 : i1 to i32
    %c0_i32_0 = arith.constant 0 : i32
    %2 = arith.cmpi ne, %1, %c0_i32_0 : i32
    scf.if %2 {
      %cst_10 = arith.constant 0.000000e+00 : f32
      %12 = vector.broadcast %cst_10 : f32 to vector<256x128xf32>
      %c0_11 = arith.constant 0 : index
      %c0_12 = arith.constant 0 : index
      %13 = vector.load %arg8[%c0_11, %c0_12] : memref<256x128xf32, #tpu.memory_space<vmem>>, vector<256x128xf32>
      tpu.vector_store %arg8[%c0_11, %c0_12], %12 {strides = array<i32>} : memref<256x128xf32, #tpu.memory_space<vmem>>, vector<256x128xf32>,
    } else {
    }
    %c0 = arith.constant 0 : index
    %c0_1 = arith.constant 0 : index
    %3 = vector.load %arg8[%c0, %c0_1] : memref<256x128xf32, #tpu.memory_space<vmem>>, vector<256x128xf32>
    %c0_2 = arith.constant 0 : index
    %c0_3 = arith.constant 0 : index
    %4 = vector.load %arg3[%c0_2, %c0_3] : memref<256x256xbf16, #tpu.memory_space<vmem>>, vector<256x256xbf16>
    %c0_4 = arith.constant 0 : index
    %c0_5 = arith.constant 0 : index
    %5 = vector.load %arg4[%c0_4, %c0_5] : memref<256x128xbf16, #tpu.memory_space<vmem>>, vector<256x128xbf16>
    %cst = arith.constant dense<0.000000e+00> : vector<256x128xf32>
    %6 = tpu.matmul %4, %5, %cst {dimension_numbers = #tpu.dot_dimension_numbers<[1], [0], [0], [1], [0, 0, 1, 1], [], []>} : vector<256x256xbf16>, vector<256x128xbf16>, vector<256x128xf32> -> vector<256x128xf32>
    %7 = arith.addf %3, %6 : vector<256x128xf32>
    %c0_6 = arith.constant 0 : index
    %c0_7 = arith.constant 0 : index
    %8 = vector.load %arg8[%c0_6, %c0_7] : memref<256x128xf32, #tpu.memory_space<vmem>>, vector<256x128xf32>
    tpu.vector_store %arg8[%c0_6, %c0_7], %7 {strides = array<i32>} : memref<256x128xf32, #tpu.memory_space<vmem>>, vector<256x128xf32>,
    %c0_i32_8 = arith.constant 0 : i32
    %9 = arith.cmpi eq, %arg2, %c0_i32_8 : i32
    %10 = arith.extui %9 : i1 to i32
    %c0_i32_9 = arith.constant 0 : i32
    %11 = arith.cmpi ne, %10, %c0_i32_9 : i32
    scf.if %11 {
      %c0_10 = arith.constant 0 : index
      %c0_11 = arith.constant 0 : index
      %12 = vector.load %arg8[%c0_10, %c0_11] : memref<256x128xf32, #tpu.memory_space<vmem>>, vector<256x128xf32>
      %c0_12 = arith.constant 0 : index
      %c0_13 = arith.constant 0 : index
      %13 = vector.load %arg5[%c0_12, %c0_13] : memref<1x128xf32, #tpu.memory_space<vmem>>, vector<1x128xf32>
      %14 = vector.broadcast %13 : vector<1x128xf32> to vector<256x128xf32>
      %15 = arith.mulf %12, %14 : vector<256x128xf32>
      %c0_14 = arith.constant 0 : index
      %c0_15 = arith.constant 0 : index
      %16 = vector.load %arg6[%c0_14, %c0_15] : memref<1x128xf32, #tpu.memory_space<vmem>>, vector<1x128xf32>
      %17 = vector.broadcast %16 : vector<1x128xf32> to vector<256x128xf32>
      %18 = arith.addf %15, %17 : vector<256x128xf32>
      %cst_16 = arith.constant 0.000000e+00 : f32
      %19 = vector.broadcast %cst_16 : f32 to vector<256x128xf32>
      %20 = arith.maximumf %18, %19 : vector<256x128xf32>
      %21 = arith.truncf %20 : vector<256x128xf32> to vector<256x128xbf16>
      %c0_17 = arith.constant 0 : index
      %c0_18 = arith.constant 0 : index
      %22 = vector.load %arg7[%c0_17, %c0_18] : memref<256x128xbf16, #tpu.memory_space<vmem>>, vector<256x128xbf16>
      tpu.vector_store %arg7[%c0_17, %c0_18], %21 {strides = array<i32>} : memref<256x128xbf16, #tpu.memory_space<vmem>>, vector<256x128xbf16>,
    } else {
    }
    return
  }
  func.func @transform_0(%arg0: i32, %arg1: i32, %arg2: i32) -> (i32, i32) {
    %c0_i32 = arith.constant 0 : i32
    return %arg0, %arg2 : i32, i32
  }
  func.func @transform_1(%arg0: i32, %arg1: i32, %arg2: i32) -> (i32, i32) {
    %c0_i32 = arith.constant 0 : i32
    return %arg2, %arg1 : i32, i32
  }
  func.func @transform_2(%arg0: i32, %arg1: i32, %arg2: i32) -> (i32, i32) {
    %c0_i32 = arith.constant 0 : i32
    %c0_i32_0 = arith.constant 0 : i32
    return %c0_i32, %arg1 : i32, i32
  }
  func.func @transform_3(%arg0: i32, %arg1: i32, %arg2: i32) -> (i32, i32) {
    %c0_i32 = arith.constant 0 : i32
    %c0_i32_0 = arith.constant 0 : i32
    return %c0_i32, %arg1 : i32, i32
  }
  func.func @transform_4(%arg0: i32, %arg1: i32, %arg2: i32) -> (i32, i32) {
    %c0_i32 = arith.constant 0 : i32
    return %arg0, %arg1 : i32, i32
  }
}

</mosaic_0001>

<bundles_post_ra>
// kernel: matmul_fused.1
= control target key start
LH: loop header
LB: loop body
LE: loop exit
PB: predicated region body
PF: predicated region fallthrough
CT: control target
= control target key end

     0   :  { %s1632_s1 = inlined_call_operand.vmem [shape: bf16[256,128], index: 1, kind: input, shape index: {}]   ;;  %s1633_s0 = inlined_call_operand.vmem [shape: bf16[256,256], index: 0, kind: input, shape index: {}]   ;;  %s1634_s2 = inlined_call_operand.vmem [shape: f32[1,128], index: 2, kind: input, shape index: {}]   ;;  %s1635_s3 = inlined_call_operand.vmem [shape: f32[1,128], index: 3, kind: input, shape index: {}]   ;;  %s1636_s4 = inlined_call_operand.vmem [shape: bf16[256,128], index: 4, kind: output, shape index: {}]  }
   0x1   :  { %v1277_v0 = vld [vmem:[%s1632_s1 + $0x40] sm:$0xff]   ;;  %v1279_v2 = vld [vmem:[%s1632_s1 + $0x48] sm:$0xff]   ;;  %v1281_v4 = vld [vmem:[%s1632_s1 + $0x50] sm:$0xff]  }
   0x2   :  { %v1278_v1 = vld [vmem:[%s1632_s1] sm:$0xff]   ;;  %1149 = vmatprep.subr.bf16.mxu0 %v1277_v0  ;;  %1261 = vmatprep.subr.bf16.mxu1 %v1277_v0  ;;  %v1280_v3 = vld [vmem:[%s1632_s1 + $0x8] sm:$0xff]   ;;  %v1282_v5 = vld [vmem:[%s1632_s1 + $0x10] sm:$0xff]  }
   0x3   :  { %1150 = vmatpush3.bf16.msra.mxu0 %v1278_v1  ;;  %1269 = vmatpush3.bf16.msra.mxu1 %v1278_v1  ;;  %v1283_v6 = vld [vmem:[%s1632_s1 + $0x58] sm:$0xff]   ;;  %v1285_v8 = vld [vmem:[%s1632_s1 + $0x60] sm:$0xff]   ;;  %v1287_v10 = vld [vmem:[%s1632_s1 + $0x68] sm:$0xff]  }
   0x4   :  { %1151 = vmatprep.subr.bf16.mxu0 %v1279_v2  ;;  %1262 = vmatprep.subr.bf16.mxu1 %v1279_v2  ;;  %v1284_v7 = vld [vmem:[%s1632_s1 + $0x18] sm:$0xff]   ;;  %v1286_v9 = vld [vmem:[%s1632_s1 + $0x20] sm:$0xff]   ;;  %v1288_v13 = vld [vmem:[%s1632_s1 + $0x28] sm:$0xff]  }
   0x5   :  { %v1295_v11 = vld [vmem:[%s1633_s0 + $0x4] ss:$8 sps:$4 sm:$0xff]   ;;  %v1289_v14 = vld [vmem:[%s1632_s1 + $0x70] sm:$0xff]   ;;  %v1291_v16 = vld [vmem:[%s1632_s1 + $0x78] sm:$0xff]  }
   0x6   :  { %v1298_v12 = vld [vmem:[%s1633_s0 + $0x84] ss:$8 sps:$4 sm:$0xff]   ;;  %438 = vmatprep.mubr.bf16.mxu0 %v1295_v11  ;;  %v1290_v15 = vld [vmem:[%s1632_s1 + $0x30] sm:$0xff]   ;;  %v1292_v17 = vld [vmem:[%s1632_s1 + $0x38] sm:$0xff]  }
   0x7   :  { %1152 = vmatpush3.bf16.msra.mxu0 %v1280_v3  ;;  %1270 = vmatpush3.bf16.msra.mxu1 %v1280_v3  ;;  %v1293_v18 = vld [vmem:[%s1633_s0] ss:$8 sps:$4 sm:$0xff]   ;;  %v1299_v20 = vld [vmem:[%s1633_s0 + $0x14] ss:$8 sps:$4 sm:$0xff]   ;;  %v1303_v22 = vld [vmem:[%s1633_s0 + $0x10] ss:$8 sps:$4 sm:$0xff]  }
   0x8   :  { %1153 = vmatprep.subr.bf16.mxu0 %v1281_v4  ;;  %1263 = vmatprep.subr.bf16.mxu1 %v1281_v4  ;;  %v1296_v19 = vld [vmem:[%s1633_s0 + $0x80] ss:$8 sps:$4 sm:$0xff]   ;;  %v1301_v21 = vld [vmem:[%s1633_s0 + $0x94] ss:$8 sps:$4 sm:$0xff]   ;;  %v1304_v23 = vld [vmem:[%s1633_s0 + $0x90] ss:$8 sps:$4 sm:$0xff]  }
   0x9   :  { %502 = vmatprep.mubr.bf16.mxu1 %v1298_v12  ;;  %v1305_v24 = vld [vmem:[%s1633_s0 + $0x24] ss:$8 sps:$4 sm:$0xff]   ;;  %v1309_v26 = vld [vmem:[%s1633_s0 + $0x20] ss:$8 sps:$4 sm:$0xff]   ;;  %v1311_v28 = vld [vmem:[%s1633_s0 + $0x34] ss:$8 sps:$4 sm:$0xff]  }
   0xa   :  { %v1307_v25 = vld [vmem:[%s1633_s0 + $0xa4] ss:$8 sps:$4 sm:$0xff]   ;;  %v1310_v27 = vld [vmem:[%s1633_s0 + $0xa0] ss:$8 sps:$4 sm:$0xff]   ;;  %v1313_v29 = vld [vmem:[%s1633_s0 + $0xb4] ss:$8 sps:$4 sm:$0xff]  }
   0xb   :  { %1154 = vmatpush3.bf16.msra.mxu0 %v1282_v5  ;;  %1271 = vmatpush3.bf16.msra.mxu1 %v1282_v5  ;;  %v1315_v30 = vld [vmem:[%s1633_s0 + $0x30] ss:$8 sps:$4 sm:$0xff]   ;;  %v1317_v32 = vld [vmem:[%s1633_s0 + $0x44] ss:$8 sps:$4 sm:$0xff]   ;;  %v1321_v34 = vld [vmem:[%s1633_s0 + $0x40] ss:$8 sps:$4 sm:$0xff]  }
   0xc   :  { %1155 = vmatprep.subr.bf16.mxu0 %v1283_v6  ;;  %1264 = vmatprep.subr.bf16.mxu1 %v1283_v6  ;;  %v1316_v31 = vld [vmem:[%s1633_s0 + $0xb0] ss:$8 sps:$4 sm:$0xff]   ;;  %v1319_v33 = vld [vmem:[%s1633_s0 + $0xc4] ss:$8 sps:$4 sm:$0xff]   ;;  %v1322_v35 = vld [vmem:[%s1633_s0 + $0xc0] ss:$8 sps:$4 sm:$0xff]  }
   0xd   :  { %v1323_v36 = vld [vmem:[%s1633_s0 + $0x54] ss:$8 sps:$4 sm:$0xff]   ;;  %v1327_v38 = vld [vmem:[%s1633_s0 + $0x50] ss:$8 sps:$4 sm:$0xff]   ;;  %v1329_v40 = vld [vmem:[%s1633_s0 + $0x64] ss:$8 sps:$4 sm:$0xff]  }
   0xe   :  { %v1325_v37 = vld [vmem:[%s1633_s0 + $0xd4] ss:$8 sps:$4 sm:$0xff]   ;;  %v1328_v39 = vld [vmem:[%s1633_s0 + $0xd0] ss:$8 sps:$4 sm:$0xff]   ;;  %v1331_v41 = vld [vmem:[%s1633_s0 + $0xe4] ss:$8 sps:$4 sm:$0xff]  }
   0xf   :  { %1156 = vmatpush3.bf16.msra.mxu0 %v1284_v7  ;;  %1272 = vmatpush3.bf16.msra.mxu1 %v1284_v7  ;;  %v1333_v42 = vld [vmem:[%s1633_s0 + $0x60] ss:$8 sps:$4 sm:$0xff]   ;;  %v1335_v44 = vld [vmem:[%s1633_s0 + $0x74] ss:$8 sps:$4 sm:$0xff]   ;;  %v1339_v46 = vld [vmem:[%s1633_s0 + $0x70] ss:$8 sps:$4 sm:$0xff]  }
  0x10   :  { %1157 = vmatprep.subr.bf16.mxu0 %v1285_v8  ;;  %1265 = vmatprep.subr.bf16.mxu1 %v1285_v8  ;;  %v1334_v43 = vld [vmem:[%s1633_s0 + $0xe0] ss:$8 sps:$4 sm:$0xff]   ;;  %v1337_v45 = vld [vmem:[%s1633_s0 + $0xf4] ss:$8 sps:$4 sm:$0xff]   ;;  %v1340_v47 = vld [vmem:[%s1633_s0 + $0xf0] ss:$8 sps:$4 sm:$0xff]  }
  0x11   :  { %v1513_v51 = vld [vmem:[%s1634_s2] ss:$0 sm:$0xff] }
  0x12   :  { %v1518_v57 = vld [vmem:[%s1635_s3] ss:$0 sm:$0xff] }
  0x13   :  { %1158 = vmatpush3.bf16.msra.mxu0 %v1286_v9  ;;  %1273 = vmatpush3.bf16.msra.mxu1 %v1286_v9 }
  0x14   :  { %1159 = vmatprep.subr.bf16.mxu0 %v1287_v10  ;;  %1266 = vmatprep.subr.bf16.mxu1 %v1287_v10 }
  0x17   :  { %1160 = vmatpush3.bf16.msra.mxu0 %v1288_v13  ;;  %1274 = vmatpush3.bf16.msra.mxu1 %v1288_v13 }
  0x18   :  { %1161 = vmatprep.subr.bf16.mxu0 %v1289_v14  ;;  %1267 = vmatprep.subr.bf16.mxu1 %v1289_v14 }
  0x1b   :  { %1162 = vmatpush3.bf16.msra.mxu0 %v1290_v15  ;;  %1275 = vmatpush3.bf16.msra.mxu1 %v1290_v15 }
  0x1c   :  { %1163 = vmatprep.subr.bf16.mxu0 %v1291_v16  ;;  %1268 = vmatprep.subr.bf16.mxu1 %v1291_v16 }
  0x1f   :  { %1164 = vmatpush3.bf16.msra.mxu0 %v1292_v17  ;;  %1276 = vmatpush3.bf16.msra.mxu1 %v1292_v17 }
  0x22   :  { %439 = vmatmul.mubr.bf16.vlgmr.msra.gmra.mrb[0].mxu0 %v1293_v18  ;;  %503 = vmatmul.mubr.bf16.vlgmr.msra.gmra.mrb[0].mxu1 %v1296_v19 }
  0x23   :  { %446 = vmatprep.mubr.bf16.mxu0 %v1299_v20  ;;  %510 = vmatprep.mubr.bf16.mxu1 %v1301_v21 }
  0x2a   :  { %447 = vmatmul.mubr.bf16.gmra.mrb[4].mxu0 %v1303_v22  ;;  %511 = vmatmul.mubr.bf16.gmra.mrb[4].mxu1 %v1304_v23 }
  0x2b   :  { %454 = vmatprep.mubr.bf16.mxu0 %v1305_v24  ;;  %518 = vmatprep.mubr.bf16.mxu1 %v1307_v25 }
  0x32   :  { %455 = vmatmul.mubr.bf16.gmra.mrb[8].mxu0 %v1309_v26  ;;  %519 = vmatmul.mubr.bf16.gmra.mrb[8].mxu1 %v1310_v27 }
  0x33   :  { %462 = vmatprep.mubr.bf16.mxu0 %v1311_v28  ;;  %526 = vmatprep.mubr.bf16.mxu1 %v1313_v29 }
  0x3a   :  { %463 = vmatmul.mubr.bf16.gmra.mrb[12].mxu0 %v1315_v30  ;;  %527 = vmatmul.mubr.bf16.gmra.mrb[12].mxu1 %v1316_v31 }
  0x3b   :  { %470 = vmatprep.mubr.bf16.mxu0 %v1317_v32  ;;  %534 = vmatprep.mubr.bf16.mxu1 %v1319_v33 }
  0x42   :  { %471 = vmatmul.mubr.bf16.gmra.mrb[16].mxu0 %v1321_v34  ;;  %535 = vmatmul.mubr.bf16.gmra.mrb[16].mxu1 %v1322_v35 }
  0x43   :  { %478 = vmatprep.mubr.bf16.mxu0 %v1323_v36  ;;  %542 = vmatprep.mubr.bf16.mxu1 %v1325_v37 }
  0x4a   :  { %479 = vmatmul.mubr.bf16.gmra.mrb[20].mxu0 %v1327_v38  ;;  %543 = vmatmul.mubr.bf16.gmra.mrb[20].mxu1 %v1328_v39 }
  0x4b   :  { %486 = vmatprep.mubr.bf16.mxu0 %v1329_v40  ;;  %550 = vmatprep.mubr.bf16.mxu1 %v1331_v41 }
  0x52   :  { %487 = vmatmul.mubr.bf16.gmra.mrb[24].mxu0 %v1333_v42  ;;  %551 = vmatmul.mubr.bf16.gmra.mrb[24].mxu1 %v1334_v43 }
  0x53   :  { %494 = vmatprep.mubr.bf16.mxu0 %v1335_v44  ;;  %558 = vmatprep.mubr.bf16.mxu1 %v1337_v45 }
  0x5a   :  { %495 = vmatmul.mubr.bf16.gmra.mrb[28].mxu0 %v1339_v46  ;;  %559 = vmatmul.mubr.bf16.gmra.mrb[28].mxu1 %v1340_v47 }
  0xf5   :  { %v1165_v48 = vpop.f32.mrb[0].mxu0  ;;  %v1213_v49 = vpop.f32.mrb[0].mxu1 }
  0xf6   :  { %v1166_v50 = vpop.f32.mrb[1].mxu0  ;;  %v1214_v52 = vpop.f32.mrb[1].mxu1 }
  0xf7   :  { %v1167_v53 = vadd.f32 %v1166_v50, %v1165_v48  ;;  %v1215_v54 = vadd.f32 %v1214_v52, %v1213_v49  ;;  %v1168_v55 = vpop.f32.mrb[2].mxu0  ;;  %v1216_v56 = vpop.f32.mrb[2].mxu1 }
  0xf8   :  { %v1169_v58 = vpop.f32.mrb[3].mxu0  ;;  %v1217_v59 = vpop.f32.mrb[3].mxu1 }
  0xf9   :  { %v673_v60 = vmul.f32 %v1167_v53, %v1513_v51  ;;  %v689_v61 = vmul.f32 %v1215_v54, %v1513_v51  ;;  %v1170_v62 = vadd.f32 %v1169_v58, %v1168_v55  ;;  %v1218_v63 = vadd.f32 %v1217_v59, %v1216_v56 }
  0xfb   :  { %v712_v0 = vadd.f32 %v1518_v57, %v673_v60  ;;  %v728_v1 = vadd.f32 %v1518_v57, %v689_v61  ;;  %v674_v2 = vmul.f32 %v1170_v62, %v1513_v51  ;;  %v690_v3 = vmul.f32 %v1218_v63, %v1513_v51 }
  0xfd   :  { %v713_v4 = vadd.f32 %v1518_v57, %v674_v2  ;;  %v729_v5 = vadd.f32 %v1518_v57, %v690_v3  ;;  %v1171_v6 = vpop.f32.mrb[4].mxu0  ;;  %v1219_v7 = vpop.f32.mrb[4].mxu1  ;;  %v744_v8 = vmax.f32 %v712_v0, 0.0  ;;  %v760_v9 = vmax.f32 %v728_v1, 0.0 }
  0xfe   :  { %v1172_v10 = vpop.f32.mrb[5].mxu0  ;;  %v1220_v11 = vpop.f32.mrb[5].mxu1 }
  0xff   :  { %v745_v12 = vmax.f32 %v713_v4, 0.0  ;;  %v761_v13 = vmax.f32 %v729_v5, 0.0  ;;  %v1173_v14 = vadd.f32 %v1172_v10, %v1171_v6  ;;  %v1221_v15 = vadd.f32 %v1220_v11, %v1219_v7  ;;  %v1174_v16 = vpop.f32.mrb[6].mxu0  ;;  %v1222_v17 = vpop.f32.mrb[6].mxu1 }
 0x100   :  { %v1175_v18 = vpop.f32.mrb[7].mxu0  ;;  %v1223_v19 = vpop.f32.mrb[7].mxu1 }
 0x101   :  { %v1057_v20 = vpack.c.bf16 %v745_v12, %v744_v8  ;;  %v1097_v21 = vpack.c.bf16 %v761_v13, %v760_v9  ;;  %v675_v22 = vmul.f32 %v1173_v14, %v1513_v51  ;;  %v691_v23 = vmul.f32 %v1221_v15, %v1513_v51 }
 0x102   :  { %v1176_v24 = vadd.f32 %v1175_v18, %v1174_v16  ;;  %v1224_v25 = vadd.f32 %v1223_v19, %v1222_v17 }
 0x103   :  { %1058 = vst [vmem:[%s1636_s4] sm:$0xff] %v1057_v20   ;;  %1141 = vst [vmem:[%s1636_s4 + $0x40] sm:$0xff] %v1097_v21   ;;  %v714_v26 = vadd.f32 %v1518_v57, %v675_v22  ;;  %v730_v27 = vadd.f32 %v1518_v57, %v691_v23 }
 0x104   :  { %v676_v28 = vmul.f32 %v1176_v24, %v1513_v51  ;;  %v692_v29 = vmul.f32 %v1224_v25, %v1513_v51 }
 0x105   :  { %v1177_v30 = vpop.f32.mrb[8].mxu0  ;;  %v1225_v31 = vpop.f32.mrb[8].mxu1  ;;  %v746_v40 = vmax.f32 %v714_v26, 0.0  ;;  %v762_v41 = vmax.f32 %v730_v27, 0.0 }
 0x106   :  { %v715_v32 = vadd.f32 %v1518_v57, %v676_v28  ;;  %v731_v33 = vadd.f32 %v1518_v57, %v692_v29  ;;  %v1178_v34 = vpop.f32.mrb[9].mxu0  ;;  %v1226_v35 = vpop.f32.mrb[9].mxu1 }
 0x107   :  { %v1179_v36 = vadd.f32 %v1178_v34, %v1177_v30  ;;  %v1227_v37 = vadd.f32 %v1226_v35, %v1225_v31  ;;  %v1180_v38 = vpop.f32.mrb[10].mxu0  ;;  %v1228_v39 = vpop.f32.mrb[10].mxu1 }
 0x108   :  { %v747_v42 = vmax.f32 %v715_v32, 0.0  ;;  %v763_v43 = vmax.f32 %v731_v33, 0.0  ;;  %v1181_v44 = vpop.f32.mrb[11].mxu0  ;;  %v1229_v45 = vpop.f32.mrb[11].mxu1 }
 0x109   :  { %v677_v46 = vmul.f32 %v1179_v36, %v1513_v51  ;;  %v693_v47 = vmul.f32 %v1227_v37, %v1513_v51  ;;  %v1182_v48 = vadd.f32 %v1181_v44, %v1180_v38  ;;  %v1230_v49 = vadd.f32 %v1229_v45, %v1228_v39 }
 0x10a   :  { %v1062_v50 = vpack.c.bf16 %v747_v42, %v746_v40  ;;  %v1102_v52 = vpack.c.bf16 %v763_v43, %v762_v41 }
 0x10b   :  { %v716_v53 = vadd.f32 %v1518_v57, %v677_v46  ;;  %v732_v54 = vadd.f32 %v1518_v57, %v693_v47  ;;  %v678_v55 = vmul.f32 %v1182_v48, %v1513_v51  ;;  %v694_v56 = vmul.f32 %v1230_v49, %v1513_v51 }
 0x10c   :  { %1134 = vst [vmem:[%s1636_s4 + $0x8] sm:$0xff] %v1062_v50   ;;  %1142 = vst [vmem:[%s1636_s4 + $0x48] sm:$0xff] %v1102_v52  }
 0x10d   :  { %v717_v58 = vadd.f32 %v1518_v57, %v678_v55  ;;  %v733_v59 = vadd.f32 %v1518_v57, %v694_v56  ;;  %v1183_v60 = vpop.f32.mrb[12].mxu0  ;;  %v1231_v61 = vpop.f32.mrb[12].mxu1  ;;  %v748_v62 = vmax.f32 %v716_v53, 0.0  ;;  %v764_v63 = vmax.f32 %v732_v54, 0.0 }
 0x10e   :  { %v1184_v0 = vpop.f32.mrb[13].mxu0  ;;  %v1232_v1 = vpop.f32.mrb[13].mxu1 }
 0x10f   :  { %v749_v2 = vmax.f32 %v717_v58, 0.0  ;;  %v765_v3 = vmax.f32 %v733_v59, 0.0  ;;  %v1185_v4 = vadd.f32 %v1184_v0, %v1183_v60  ;;  %v1233_v5 = vadd.f32 %v1232_v1, %v1231_v61  ;;  %v1186_v6 = vpop.f32.mrb[14].mxu0  ;;  %v1234_v7 = vpop.f32.mrb[14].mxu1 }
 0x110   :  { %v1187_v8 = vpop.f32.mrb[15].mxu0  ;;  %v1235_v9 = vpop.f32.mrb[15].mxu1 }
 0x111   :  { %v1067_v10 = vpack.c.bf16 %v749_v2, %v748_v62  ;;  %v1107_v11 = vpack.c.bf16 %v765_v3, %v764_v63  ;;  %v679_v12 = vmul.f32 %v1185_v4, %v1513_v51  ;;  %v695_v13 = vmul.f32 %v1233_v5, %v1513_v51 }
 0x112   :  { %v1188_v14 = vadd.f32 %v1187_v8, %v1186_v6  ;;  %v1236_v15 = vadd.f32 %v1235_v9, %v1234_v7 }
 0x113   :  { %1135 = vst [vmem:[%s1636_s4 + $0x10] sm:$0xff] %v1067_v10   ;;  %1143 = vst [vmem:[%s1636_s4 + $0x50] sm:$0xff] %v1107_v11   ;;  %v718_v16 = vadd.f32 %v1518_v57, %v679_v12  ;;  %v734_v17 = vadd.f32 %v1518_v57, %v695_v13 }
 0x114   :  { %v680_v18 = vmul.f32 %v1188_v14, %v1513_v51  ;;  %v696_v19 = vmul.f32 %v1236_v15, %v1513_v51 }
 0x115   :  { %v1189_v20 = vpop.f32.mrb[16].mxu0  ;;  %v1237_v21 = vpop.f32.mrb[16].mxu1  ;;  %v750_v30 = vmax.f32 %v718_v16, 0.0  ;;  %v766_v31 = vmax.f32 %v734_v17, 0.0 }
 0x116   :  { %v719_v22 = vadd.f32 %v1518_v57, %v680_v18  ;;  %v735_v23 = vadd.f32 %v1518_v57, %v696_v19  ;;  %v1190_v24 = vpop.f32.mrb[17].mxu0  ;;  %v1238_v25 = vpop.f32.mrb[17].mxu1 }
 0x117   :  { %v1191_v26 = vadd.f32 %v1190_v24, %v1189_v20  ;;  %v1239_v27 = vadd.f32 %v1238_v25, %v1237_v21  ;;  %v1192_v28 = vpop.f32.mrb[18].mxu0  ;;  %v1240_v29 = vpop.f32.mrb[18].mxu1 }
 0x118   :  { %v751_v32 = vmax.f32 %v719_v22, 0.0  ;;  %v767_v33 = vmax.f32 %v735_v23, 0.0  ;;  %v1193_v34 = vpop.f32.mrb[19].mxu0  ;;  %v1241_v35 = vpop.f32.mrb[19].mxu1 }
 0x119   :  { %v681_v36 = vmul.f32 %v1191_v26, %v1513_v51  ;;  %v697_v37 = vmul.f32 %v1239_v27, %v1513_v51  ;;  %v1194_v38 = vadd.f32 %v1193_v34, %v1192_v28  ;;  %v1242_v39 = vadd.f32 %v1241_v35, %v1240_v29 }
 0x11a   :  { %v1072_v40 = vpack.c.bf16 %v751_v32, %v750_v30  ;;  %v1112_v41 = vpack.c.bf16 %v767_v33, %v766_v31 }
 0x11b   :  { %v720_v42 = vadd.f32 %v1518_v57, %v681_v36  ;;  %v736_v43 = vadd.f32 %v1518_v57, %v697_v37  ;;  %v682_v44 = vmul.f32 %v1194_v38, %v1513_v51  ;;  %v698_v45 = vmul.f32 %v1242_v39, %v1513_v51 }
 0x11c   :  { %1136 = vst [vmem:[%s1636_s4 + $0x18] sm:$0xff] %v1072_v40   ;;  %1144 = vst [vmem:[%s1636_s4 + $0x58] sm:$0xff] %v1112_v41  }
 0x11d   :  { %v721_v46 = vadd.f32 %v1518_v57, %v682_v44  ;;  %v737_v47 = vadd.f32 %v1518_v57, %v698_v45  ;;  %v1195_v48 = vpop.f32.mrb[20].mxu0  ;;  %v1243_v49 = vpop.f32.mrb[20].mxu1  ;;  %v752_v50 = vmax.f32 %v720_v42, 0.0  ;;  %v768_v52 = vmax.f32 %v736_v43, 0.0 }
 0x11e   :  { %v1196_v53 = vpop.f32.mrb[21].mxu0  ;;  %v1244_v54 = vpop.f32.mrb[21].mxu1 }
 0x11f   :  { %v753_v55 = vmax.f32 %v721_v46, 0.0  ;;  %v769_v56 = vmax.f32 %v737_v47, 0.0  ;;  %v1197_v58 = vadd.f32 %v1196_v53, %v1195_v48  ;;  %v1245_v59 = vadd.f32 %v1244_v54, %v1243_v49  ;;  %v1198_v60 = vpop.f32.mrb[22].mxu0  ;;  %v1246_v61 = vpop.f32.mrb[22].mxu1 }
 0x120   :  { %v1199_v62 = vpop.f32.mrb[23].mxu0  ;;  %v1247_v63 = vpop.f32.mrb[23].mxu1 }
 0x121   :  { %v1077_v0 = vpack.c.bf16 %v753_v55, %v752_v50  ;;  %v1117_v1 = vpack.c.bf16 %v769_v56, %v768_v52  ;;  %v683_v2 = vmul.f32 %v1197_v58, %v1513_v51  ;;  %v699_v3 = vmul.f32 %v1245_v59, %v1513_v51 }
 0x122   :  { %v1200_v4 = vadd.f32 %v1199_v62, %v1198_v60  ;;  %v1248_v5 = vadd.f32 %v1247_v63, %v1246_v61 }
 0x123   :  { %1137 = vst [vmem:[%s1636_s4 + $0x20] sm:$0xff] %v1077_v0   ;;  %1145 = vst [vmem:[%s1636_s4 + $0x60] sm:$0xff] %v1117_v1   ;;  %v722_v6 = vadd.f32 %v1518_v57, %v683_v2  ;;  %v738_v7 = vadd.f32 %v1518_v57, %v699_v3 }
 0x124   :  { %v684_v8 = vmul.f32 %v1200_v4, %v1513_v51  ;;  %v700_v9 = vmul.f32 %v1248_v5, %v1513_v51 }
 0x125   :  { %v1201_v10 = vpop.f32.mrb[24].mxu0  ;;  %v1249_v11 = vpop.f32.mrb[24].mxu1  ;;  %v754_v20 = vmax.f32 %v722_v6, 0.0  ;;  %v770_v21 = vmax.f32 %v738_v7, 0.0 }
 0x126   :  { %v723_v12 = vadd.f32 %v1518_v57, %v684_v8  ;;  %v739_v13 = vadd.f32 %v1518_v57, %v700_v9  ;;  %v1202_v14 = vpop.f32.mrb[25].mxu0  ;;  %v1250_v15 = vpop.f32.mrb[25].mxu1 }
 0x127   :  { %v1203_v16 = vadd.f32 %v1202_v14, %v1201_v10  ;;  %v1251_v17 = vadd.f32 %v1250_v15, %v1249_v11  ;;  %v1204_v18 = vpop.f32.mrb[26].mxu0  ;;  %v1252_v19 = vpop.f32.mrb[26].mxu1 }
 0x128   :  { %v755_v22 = vmax.f32 %v723_v12, 0.0  ;;  %v771_v23 = vmax.f32 %v739_v13, 0.0  ;;  %v1205_v24 = vpop.f32.mrb[27].mxu0  ;;  %v1253_v25 = vpop.f32.mrb[27].mxu1 }
 0x129   :  { %v685_v26 = vmul.f32 %v1203_v16, %v1513_v51  ;;  %v701_v27 = vmul.f32 %v1251_v17, %v1513_v51  ;;  %v1206_v28 = vadd.f32 %v1205_v24, %v1204_v18  ;;  %v1254_v29 = vadd.f32 %v1253_v25, %v1252_v19 }
 0x12a   :  { %v1082_v30 = vpack.c.bf16 %v755_v22, %v754_v20  ;;  %v1122_v31 = vpack.c.bf16 %v771_v23, %v770_v21 }
 0x12b   :  { %v724_v32 = vadd.f32 %v1518_v57, %v685_v26  ;;  %v740_v33 = vadd.f32 %v1518_v57, %v701_v27  ;;  %v686_v34 = vmul.f32 %v1206_v28, %v1513_v51  ;;  %v702_v35 = vmul.f32 %v1254_v29, %v1513_v51 }
 0x12c   :  { %1138 = vst [vmem:[%s1636_s4 + $0x28] sm:$0xff] %v1082_v30   ;;  %1146 = vst [vmem:[%s1636_s4 + $0x68] sm:$0xff] %v1122_v31  }
 0x12d   :  { %v725_v36 = vadd.f32 %v1518_v57, %v686_v34  ;;  %v741_v37 = vadd.f32 %v1518_v57, %v702_v35  ;;  %v1207_v38 = vpop.f32.mrb[28].mxu0  ;;  %v1255_v39 = vpop.f32.mrb[28].mxu1  ;;  %v756_v40 = vmax.f32 %v724_v32, 0.0  ;;  %v772_v41 = vmax.f32 %v740_v33, 0.0 }
 0x12e   :  { %v1208_v42 = vpop.f32.mrb[29].mxu0  ;;  %v1256_v43 = vpop.f32.mrb[29].mxu1 }
 0x12f   :  { %v757_v44 = vmax.f32 %v725_v36, 0.0  ;;  %v773_v45 = vmax.f32 %v741_v37, 0.0  ;;  %v1209_v46 = vadd.f32 %v1208_v42, %v1207_v38  ;;  %v1257_v47 = vadd.f32 %v1256_v43, %v1255_v39  ;;  %v1210_v48 = vpop.f32.mrb[30].mxu0  ;;  %v1258_v49 = vpop.f32.mrb[30].mxu1 }
 0x130   :  { %v1211_v50 = vpop.f32.mrb[31].mxu0  ;;  %v1259_v52 = vpop.f32.mrb[31].mxu1 }
 0x131   :  { %v1087_v53 = vpack.c.bf16 %v757_v44, %v756_v40  ;;  %v1127_v54 = vpack.c.bf16 %v773_v45, %v772_v41  ;;  %v687_v55 = vmul.f32 %v1209_v46, %v1513_v51  ;;  %v703_v56 = vmul.f32 %v1257_v47, %v1513_v51 }
 0x132   :  { %v1212_v58 = vadd.f32 %v1211_v50, %v1210_v48  ;;  %v1260_v59 = vadd.f32 %v1259_v52, %v1258_v49 }
 0x133   :  { %1139 = vst [vmem:[%s1636_s4 + $0x30] sm:$0xff] %v1087_v53   ;;  %1147 = vst [vmem:[%s1636_s4 + $0x70] sm:$0xff] %v1127_v54   ;;  %v726_v60 = vadd.f32 %v1518_v57, %v687_v55  ;;  %v742_v61 = vadd.f32 %v1518_v57, %v703_v56 }
 0x134   :  { %v688_v62 = vmul.f32 %v1212_v58, %v1513_v51  ;;  %v704_v63 = vmul.f32 %v1260_v59, %v1513_v51 }
 0x135   :  { %v758_v2 = vmax.f32 %v726_v60, 0.0  ;;  %v774_v3 = vmax.f32 %v742_v61, 0.0 }
 0x136   :  { %v727_v0 = vadd.f32 %v1518_v57, %v688_v62  ;;  %v743_v1 = vadd.f32 %v1518_v57, %v704_v63 }
 0x138   :  { %v759_v4 = vmax.f32 %v727_v0, 0.0  ;;  %v775_v5 = vmax.f32 %v743_v1, 0.0 }
 0x13a   :  { %v1092_v6 = vpack.c.bf16 %v759_v4, %v758_v2  ;;  %v1132_v7 = vpack.c.bf16 %v775_v5, %v774_v3 }
 0x13c   :  { %1140 = vst [vmem:[%s1636_s4 + $0x38] sm:$0xff] %v1092_v6   ;;  %1148 = vst [vmem:[%s1636_s4 + $0x78] sm:$0xff] %v1132_v7  }

</bundles_post_ra>
